<compile_context>
chip_gen: v7x
topology: tpu7x:2x2x1
jax: 0.10.0
libtpu: 0.0.40
codegen_flags: <defaults>
</compile_context>

<pallas_src>
import jax
import jax.numpy as jnp
from jax.experimental import pallas as pl
from jax.experimental.pallas import tpu as pltpu


def _temporal_interaction_kernel(b_ref, w_ref, x_ref, o_ref):
    # x_ref block: (1, n_div, f_tile); w_ref: (n_div, n_div) tridiagonal.
    x = x_ref[0]                                               # (n_div, f_tile)
    out = jnp.dot(w_ref[...], x, preferred_element_type=jnp.float32)
    o_ref[0] = (out + b_ref[0]).astype(o_ref.dtype)


def _pick_feature_tile(feat, n_div, itemsize, n_batch,
                       target_block_bytes=1 << 20):
    """~1 MiB, 128-aligned feature tiles; full extent if feat is small."""
    f_target = max(128, ((target_block_bytes // (n_div * itemsize)) // 128) * 128)
    if feat <= f_target:
        # Ensure >= 2 grid points when possible (v7x has 2 TensorCores).
        if n_batch == 1 and feat >= 256 and feat % 128 == 0:
            return ((feat // 2 + 127) // 128) * 128
        return feat                       # full-extent block (always legal)
    return f_target                       # ragged last block handled by cdiv


def _vmem_limit_bytes():
    """<= half of physical VMEM, capped at 48 MiB (generation-aware)."""
    try:
        cap = pltpu.get_tpu_info().vmem_capacity_bytes
    except Exception:
        cap = 64 * 1024 * 1024            # conservative (v7x-sized) fallback
    return int(min(cap // 2, 48 * 1024 * 1024))


def temporal_interaction(x, conv_w, conv_b, n_div=8):
    """x: (nt, c, h, w); conv_w: (3,), conv_b: ()  [nn.Conv2d(3, 1, 1x1)]."""
    nt, c, h, w = x.shape
    assert nt % n_div == 0, "nt must be divisible by n_div"
    n_batch = nt // n_div
    feat = c * h * w

    # Lane-dense layout: flatten (c, h, w) into one trailing feature axis;
    # the conv weight is shared across channels, so this is pure index
    # bookkeeping with no data movement.
    xr = x.reshape(n_batch, n_div, feat)

    # Tridiagonal stencil matrix:  out[t] = w0*x[t-1] + w1*x[t] + w2*x[t+1],
    # with zero padding at t = 0 and t = n_div-1 (rows simply miss the tap).
    wf = conv_w.astype(jnp.float32).reshape(3)
    wmat = (wf[1] * jnp.eye(n_div, dtype=jnp.float32)
            + wf[0] * jnp.eye(n_div, k=-1, dtype=jnp.float32)
            + wf[2] * jnp.eye(n_div, k=1, dtype=jnp.float32))
    # Feed the MXU in the input dtype when the input is a packed float type
    # (bf16/f16 x bf16/f16 -> f32 accumulate) to avoid block-sized upcasts.
    if x.dtype in (jnp.bfloat16, jnp.float16):
        wmat = wmat.astype(x.dtype)
    b_arr = conv_b.astype(jnp.float32).reshape(1)

    f_tile = _pick_feature_tile(feat, n_div, x.dtype.itemsize, n_batch)
    n_ftiles = pl.cdiv(feat, f_tile)

    blk = (1, n_div, f_tile)

    def idx_map(b, f):
        return (b, 0, f)

    out = pl.pallas_call(
        _temporal_interaction_kernel,
        out_shape=jax.ShapeDtypeStruct((n_batch, n_div, feat), x.dtype),
        grid=(n_batch, n_ftiles),
        in_specs=[
            pl.BlockSpec(memory_space=pltpu.MemorySpace.SMEM),       # bias
            pl.BlockSpec((n_div, n_div), lambda b, f: (0, 0)),       # stencil W
            pl.BlockSpec(blk, idx_map),                              # x (read once)
        ],
        out_specs=pl.BlockSpec(blk, idx_map),
        compiler_params=pltpu.CompilerParams(
            dimension_semantics=("parallel", "parallel"),
            vmem_limit_bytes=_vmem_limit_bytes()),
    )(b_arr, wmat, xr)

    return out.reshape(nt, c, h, w)


def ref_forward(x, conv_w, conv_b, n_div=8):
    """Pure-JAX reference that mirrors the PyTorch forward literally."""
    nt, c, h, w = x.shape
    n_batch = nt // n_div
    xr = (x.reshape(n_batch, n_div, c, h, w)
           .transpose(0, 2, 1, 3, 4)
           .reshape(n_batch * c, n_div, h, w))
    zp = jnp.zeros_like(xr[:, :1])
    xp = jnp.concatenate([zp, xr, zp], axis=1)
    outs = []
    for i in range(n_div):
        win = xp[:, i:i + 3]                               # (N, 3, h, w)
        o = jnp.einsum('nthw,t->nhw', win, conv_w) + conv_b
        outs.append(o[:, None])
    xf = jnp.concatenate(outs, axis=1)                     # (N, n_div, h, w)
    xf = (xf.reshape(n_batch, c, n_div, h, w)
            .transpose(0, 2, 1, 3, 4)
            .reshape(nt, c, h, w))
    return xf


if __name__ == "__main__":
    key = jax.random.PRNGKey(0)
    k1, k2, k3 = jax.random.split(key, 3)

    n_div = 8
    n_batch = 2
    nt = n_batch * n_div          # 16
    c, h, w = 4, 16, 16

    x = jax.random.normal(k1, (nt, c, h, w), dtype=jnp.float32)
    # Params for nn.Conv2d(conv_core=3, 1, kernel_size=(1,1)).
    conv_w = jax.random.normal(k2, (3,), dtype=jnp.float32) * 0.1
    conv_b = (jax.random.normal(k3, (), dtype=jnp.float32) * 0.1)

    out = temporal_interaction(x, conv_w, conv_b, n_div=n_div)
    out = jax.block_until_ready(out)

    ref = ref_forward(x, conv_w, conv_b, n_div=n_div)
    assert out.shape == (nt, c, h, w)
    assert jnp.allclose(out, ref, atol=1e-5, rtol=1e-5)

    print("KERNEL_OK")
</pallas_src>

<mosaic_0001>
module attributes {stable_mosaic.version = 11 : i64} {
  func.func @_temporal_interaction_kernel(%arg0: i32, %arg1: i32, %arg2: memref<1xf32, #tpu.memory_space<smem>>, %arg3: memref<8x8xf32, #tpu.memory_space<vmem>>, %arg4: memref<1x8x1024xf32, #tpu.memory_space<vmem>>, %arg5: memref<1x8x1024xf32, #tpu.memory_space<vmem>>) attributes {dimension_semantics = [#tpu.dimension_semantics<parallel>, #tpu.dimension_semantics<parallel>], iteration_bounds = array<i64: 2, 1>, scalar_prefetch = 0 : i64, scratch_operands = 0 : i64, tpu.core_type = #tpu.core_type<tc>, window_params = [{transform_indices = @transform_0, window_bounds = array<i64: 1>}, {pipeline_mode = #tpu.pipeline_mode<synchronous>, transform_indices = @transform_1, window_bounds = array<i64: 8, 8>}, {transform_indices = @transform_2, window_bounds = array<i64: 1, 8, 1024>}, {transform_indices = @transform_3, window_bounds = array<i64: 1, 8, 1024>}]} {
    %c0 = arith.constant 0 : index
    %c0_0 = arith.constant 0 : index
    %c0_1 = arith.constant 0 : index
    %0 = vector.load %arg4[%c0, %c0_0, %c0_1] : memref<1x8x1024xf32, #tpu.memory_space<vmem>>, vector<1x8x1024xf32>
    %1 = vector.shape_cast %0 : vector<1x8x1024xf32> to vector<8x1024xf32>
    %c0_2 = arith.constant 0 : index
    %c0_3 = arith.constant 0 : index
    %2 = vector.load %arg3[%c0_2, %c0_3] : memref<8x8xf32, #tpu.memory_space<vmem>>, vector<8x8xf32>
    %cst = arith.constant dense<0.000000e+00> : vector<8x1024xf32>
    %3 = tpu.matmul %2, %1, %cst {dimension_numbers = #tpu.dot_dimension_numbers<[1], [0], [0], [1], [0, 0, 1, 1], [], []>} : vector<8x8xf32>, vector<8x1024xf32>, vector<8x1024xf32> -> vector<8x1024xf32>
    %c0_4 = arith.constant 0 : index
    %4 = memref.load %arg2[%c0_4] : memref<1xf32, #tpu.memory_space<smem>>
    %5 = vector.broadcast %4 : f32 to vector<8x1024xf32>
    %6 = arith.addf %3, %5 : vector<8x1024xf32>
    %c0_5 = arith.constant 0 : index
    %c0_6 = arith.constant 0 : index
    %c0_7 = arith.constant 0 : index
    %7 = vector.load %arg5[%c0_5, %c0_6, %c0_7] : memref<1x8x1024xf32, #tpu.memory_space<vmem>>, vector<1x8x1024xf32>
    %8 = vector.shape_cast %7 : vector<1x8x1024xf32> to vector<8x1024xf32>
    %9 = vector.shape_cast %6 : vector<8x1024xf32> to vector<1x8x1024xf32>
    tpu.vector_store %arg5[%c0_5, %c0_6, %c0_7], %9 {strides = array<i32>} : memref<1x8x1024xf32, #tpu.memory_space<vmem>>, vector<1x8x1024xf32>,
    return
  }
  func.func @transform_0(%arg0: i32, %arg1: i32) -> i32 {
    %c0_i32 = arith.constant 0 : i32
    %c0_i32_0 = arith.constant 0 : i32
    return %c0_i32 : i32
  }
  func.func @transform_1(%arg0: i32, %arg1: i32) -> (i32, i32) {
    %c0_i32 = arith.constant 0 : i32
    %c0_i32_0 = arith.constant 0 : i32
    %c0_i32_1 = arith.constant 0 : i32
    return %c0_i32, %c0_i32_0 : i32, i32
  }
  func.func @transform_2(%arg0: i32, %arg1: i32) -> (i32, i32, i32) {
    %c0_i32 = arith.constant 0 : i32
    %c0_i32_0 = arith.constant 0 : i32
    return %arg0, %c0_i32, %arg1 : i32, i32, i32
  }
  func.func @transform_3(%arg0: i32, %arg1: i32) -> (i32, i32, i32) {
    %c0_i32 = arith.constant 0 : i32
    %c0_i32_0 = arith.constant 0 : i32
    return %arg0, %c0_i32, %arg1 : i32, i32, i32
  }
}

</mosaic_0001>

<bundles_post_ra>
// kernel: tpu_custom_call.1
= control target key start
LH: loop header
LB: loop body
LE: loop exit
PB: predicated region body
PF: predicated region fallthrough
CT: control target
= control target key end

     0   :  { %s1135_s0 = inlined_call_operand.<no memory space> [shape: f32[1], index: 0, kind: input, shape index: {}]   ;;  %s1136_s1 = inlined_call_operand.hbm [shape: f32[8,8], index: 1, kind: input, shape index: {}]   ;;  %s1137_s2 = inlined_call_operand.hbm [shape: f32[2,8,1024], index: 2, kind: input, shape index: {}]   ;;  %s1138_s3 = inlined_call_operand.hbm [shape: f32[2,8,1024], index: 3, kind: output, shape index: {}]  }
   0x1   :  { %8 = sst [smem:[#allocation2]] %s1135_s0 }
   0x2   :  { %9 = vsyncpa [#allocation4], 0 }
   0x3   :  { %10 = vsyncpa [#allocation7], 0 }
   0x4   :  { %12 = vsyncpa [#allocation7 + $0x1], 0 }
   0x5   :  { %13 = vsyncpa [#allocation5], 0 }
   0x6   :  { %15 = vsyncpa [#allocation5 + $0x1], 0  ;;  %s911_s14 = smov 0   ;;  %s913_s15 = smov 0  }
   0x7   :  { %s915_s16 = smov 0   ;;  %s917_s17 = smov 0  }
   0x8   :  { %s919_s18 = smov 0   ;;  %s921_s19 = smov 0  }
   0x9 LB: > { %s641_s0 = sadd.s32 4294967295, %s882_s19   ;;  %s642_s20 = sadd.s32 4294967294, %s882_s19   ;;  %s882_s19 = sphi %s921_s19, %s21_s19   ;;  %s878_s18 = sphi %s919_s18, %s1163_s18   ;;  %s874_s17 = sphi %s917_s17, %s1162_s17   ;;  %s870_s16 = sphi %s915_s16, %s1161_s16   ;;  %s866_s15 = sphi %s913_s15, %s1160_s15   ;;  %s862_s14 = sphi %s911_s14, %s1159_s14  }
   0xa   : > { %p97_p0 = scmp.ne.s32.totalorder %s866_s15, %s862_s14  ;;  %p945_p1 = scmp.eq.s32.totalorder %s641_s0, 0 }
   0xb   : > { %p949_p2 = scmp.eq.s32.totalorder %s641_s0, 1  ;;  %p129_p3 = scmp.eq.s32.totalorder %s642_s20, 1 }
   0xc   : > { %s1143_s21 = scalar_select %p945_p1, 1, 0 }
   0xd   : > { %s1144_s22 = scalar_select %p949_p2, 1, 0 }
   0xe   : > { %p955_p4 = por %p945_p1, %p97_p0  ;;  %p643_p5 = scmp.ge.s32.totalorder %s882_s19, 1 }
   0xf   : > { %p960_p6 = por %p129_p3, %p97_p0  ;;  %p136_p7 = scmp.lt.s32.totalorder %s882_s19, 3 }
  0x10   : > { %s1145_s23 = scalar_select %p955_p4, 1, 0 }
  0x11   : > { %s1146_s24 = scalar_select %p960_p6, 1, 0 }
  0x12   : > { %p965_p8 = pnand %p643_p5, %p136_p7  ;;  %s884_s26 = smov [#allocation3]  }
  0x13   : > { %s152_s27 = sshll.u32 %s884_s26, 4  ;;  %s33_s29 = sadd.s32 1, %s878_s18  ;;  %s153_s27 = int_to_ptr.vmem [resolvable:$true] %s152_s27 }
  0x14   : > { %s1147_s25 = scalar_select %p965_p8, 1, 0 }
  0x15   : > { %p672_p10 = pneg %p965_p8  ;;  %s84_s30 = sadd.s32 1, %s870_s16 }
  0x16   : > { %p980_p12 = scmp.ge.s32.totalorder %s33_s29, 2  ;;  %s738_s7 = scalar_lea.hbm %s1136_s1, 128 }
  0x17   : > { %p974_p11 = pnand %p672_p10, %p945_p1  ;;  %p739_p13 = scmp.ne.s32.totalorder %s1136_s1, %s738_s7 }
  0x18   : > { %s1149_s4 = scalar_select %p980_p12, 1, 0 }
  0x19   : > { %p740_p0 = pneg %p974_p11  ;;  %p745_p7 = scmp.lt.u32.totalorder %s738_s7, %s1136_s1 }
  0x1b   : > { %p741_p3 = pnand %p740_p0, %p739_p13 }
  0x1d   : > { %p742_p5 = pneg %p741_p3 }
  0x1f   : > { %p747_p10 = pnand %p745_p7, %p742_p5 }
  0x21   : > { %750 = shalt.err (!%p747_p10)
}
  0x22   : > { %s751_s12 = scalar_lea.vmem %s153_s27, 128  ;;  %p759_p1 = scmp.lt.s32.totalorder %s153_s27, %s153_s27 }
  0x23   : > { %p752_p9 = scmp.ne.s32.totalorder %s153_s27, %s751_s12  ;;  %p760_p8 = scmp.lt.s32.totalorder %s751_s12, %s751_s12 }
  0x25   : > { %p754_p6 = pnand %p752_p9, %p740_p0  ;;  %p761_p2 = por %p760_p8, %p759_p1 }
  0x27   : > { %p755_p4 = pneg %p754_p6 }
  0x29   : > { %p762_p12 = pnand %p761_p2, %p755_p4 }
  0x2b   : > { %765 = shalt.err (!%p762_p12)
}
  0x2c   : > { %675 = dma.hbm_to_vmem [thread:$0]  (!%p974_p11), %s1136_s1, 128, %s153_s27, [#allocation4]  }
  0x2d   : > { %p1150_p1 = scmp.ne.s32.totalorder %s1149_s4, 0  ;;  %p91_p2 = scmp.ne.s32.totalorder %s870_s16, %s866_s15 }
  0x2e   : > { %p92_p4 = scmp.eq.s32.totalorder %s882_s19, 0  ;;  %p685_p6 = scmp.lt.s32.totalorder %s882_s19, 2 }
  0x2f   : > { %s1165_s29 = smov (%p1150_p1, %s33_s29), 0  ;;  %p1151_p12 = scmp.ne.s32.totalorder %s1144_s22, 0 }
  0x30   : > { %s79_s20 = ssub.s32 %s878_s18, %s1165_s29  ;;  %p93_p9 = por %p92_p4, %p91_p2 }
  0x31   : > { %p82_p8 = scmp.eq.s32.totalorder %s79_s20, 0  ;;  %p1012_p13 = por %p1151_p12, %p91_p2 }
  0x32   : > { %s163_s28 = sand.u32 1, %s870_s16   ;;  %s662_s4 = sshll.u32 %s878_s18, 10 }
  0x33   : > { %s1020_s5 = scalar_select %p82_p8, %s870_s16, %s84_s30  }
  0x34   : > { %s646_s27 = sshll.u32 %s163_s28, 6  ;;  %s1026_s8 = scalar_lea.hbm %s1137_s2, %s662_s4 }
  0x35   : > { %s167_s22 = scalar_lea.vmem [#allocation6], %s646_s27  ;;  %p1030_p11 = pnand %p685_p6, %p93_p9 }
  0x36   : > { %s177_s9 = sshll.u32 %s167_s22, 4  ;;  %s164_s30 = scalar_lea.sflag [#allocation7], %s163_s28  ;;  %s1028_s9 = int_to_ptr.vmem [resolvable:$true] %s177_s9 }
  0x37   : > { %s766_s11 = scalar_lea.hbm %s1026_s8, 1024  ;;  %p768_p3 = pneg %p1030_p11 }
  0x38   : > { %p767_p0 = scmp.ne.s32.totalorder %s1026_s8, %s766_s11  ;;  %s771_s0 = scalar_lea.hbm %s1137_s2, 2048 }
  0x39   : > { %p772_p10 = scmp.lt.u32.totalorder %s1026_s8, %s1137_s2  ;;  %p773_p1 = scmp.lt.u32.totalorder %s771_s0, %s766_s11 }
  0x3a   : > { %p769_p5 = pnand %p768_p3, %p767_p0  ;;  %p775_p4 = scmp.lt.u32.totalorder %s766_s11, %s1026_s8 }
  0x3b   : > { %p774_p2 = por %p773_p1, %p772_p10 }
  0x3c   : > { %p770_p7 = pneg %p769_p5 }
  0x3d   : > { %p776_p6 = por %p775_p4, %p774_p2 }
  0x3f   : > { %p777_p8 = pnand %p776_p6, %p770_p7 }
  0x41   : > { %780 = shalt.err (!%p777_p8)
}
  0x42   : > { %s781_s28 = scalar_lea.vmem %s1028_s9, 1024  ;;  %s885_s4 = smov [#allocation6]  }
  0x43   : > { %p782_p9 = scmp.ne.s32.totalorder %s1028_s9, %s781_s28  ;;  %s786_s6 = sshll.u32 %s885_s4, 4  ;;  %s787_s6 = int_to_ptr.vmem [resolvable:$false] %s786_s6 }
  0x44   : > { %s788_s7 = scalar_lea.vmem %s787_s6, 2048  ;;  %p789_p5 = scmp.lt.s32.totalorder %s1028_s9, %s787_s6 }
  0x45   : > { %p784_p12 = pnand %p782_p9, %p768_p3  ;;  %p790_p10 = scmp.lt.s32.totalorder %s788_s7, %s781_s28 }
  0x47   : > { %p785_p0 = pneg %p784_p12  ;;  %p791_p1 = por %p790_p10, %p789_p5 }
  0x49   : > { %p792_p2 = pnand %p791_p1, %p785_p0 }
  0x4b   : > { %795 = shalt.err (!%p792_p2)
}
  0x4c   : > { %679 = dma.hbm_to_vmem [thread:$0]  (!%p1030_p11), %s1026_s8, 1024, %s1028_s9, %s164_s30  }
  0x4d   : > { %p1154_p7 = scmp.ne.s32.totalorder %s1147_s25, 0 }
  0x4e   : > { %p1155_p3 = scmp.ne.s32.totalorder (!%p1154_p7), %s1143_s21, 0 }
  0x4f   : > { %186 = sbr.rel (%p1154_p7) target bundleno = 328 (0x148), region = 32 }
  0x56   : > { %849 = dma.done.wait (%p1155_p3), [#allocation4], 128  }
  0x57   : > { %851 = vsyncadd (%p1155_p3), [#allocation4], 4294967168  ;;  %s1066_s22 = sand.u32 1, %s866_s15   ;;  %p1156_p11 = scmp.ne.s32.totalorder %s1145_s23, 0 }
  0x58   : > { %s651_s10 = sshll.u32 %s1066_s22, 6  ;;  %s193_s11 = scalar_lea.sflag [#allocation7], %s1066_s22 }
  0x59   : > { %s196_s8 = scalar_lea.vmem [#allocation6], %s651_s10 }
  0x5a   : > { %853 = dma.done.wait (%p1156_p11), %s193_s11, 1024  }
  0x5b   : > { %855 = vsyncadd (%p1156_p11), %s193_s11, 4294966272  ;;  %v886_v0 = vmov 0.0   ;;  %v222_v1 = vld [vmem:[%s196_s8 + $0x8] sm:$0xff]  ;;  %v224_v2 = vld [vmem:[%s196_s8 + $0x18] sm:$0xff]  ;;  %vm232_vm0 = vcmask 64512   ;;  %s230_s21 = sld [smem:[#allocation2]] }
  0x5c   : > { %300 = vmatprep.mubr.f32.mxu0 %v886_v0  ;;  %371 = vmatprep.mubr.f32.mxu1 %v886_v0  ;;  %v221_v3 = vld [vmem:[%s196_s8] sm:$0xff]  ;;  %v223_v4 = vld [vmem:[%s196_s8 + $0x10] sm:$0xff]  ;;  %v229_v5 = vld [vmem:[#allocation3] sm:$0xff]  ;;  %s218_s23 = scalar_lea.vmem [#allocation8], %s651_s10  ;;  %s663_s25 = sshll.u32 %s874_s17, 10 }
  0x5d   : > { %236 = vmatprep.subr.mxu0 %v222_v1  ;;  %307 = vmatprep.subr.mxu1 %v224_v2  ;;  %v226_v6 = vld [vmem:[%s196_s8 + $0x28] sm:$0xff]  ;;  %v228_v7 = vld [vmem:[%s196_s8 + $0x38] sm:$0xff]  ;;  %v225_v8 = vld [vmem:[%s196_s8 + $0x20] sm:$0xff]  ;;  %s545_s9 = sshll.u32 %s218_s23, 4  ;;  %s1086_s13 = scalar_lea.hbm %s1138_s3, %s663_s25  ;;  %s1088_s9 = int_to_ptr.vmem [resolvable:$true] %s545_s9 }
  0x5e   : > { %237 = vmatpush1.msra.mxu0 %v221_v3  ;;  %308 = vmatpush1.msra.mxu1 %v223_v4  ;;  %v227_v9 = vld [vmem:[%s196_s8 + $0x30] sm:$0xff]  ;;  %s529_s17 = scalar_lea.sflag [#allocation5], %s1066_s22  ;;  %s796_s0 = scalar_lea.vmem %s1088_s9, 1024 }
  0x5f   : > { %653 = vmatmul.mubr.msk.f32.vlgmr.msra.gmra.mrb[0].mxu0 %vm232_vm0, %v229_v5  ;;  %654 = vmatmul.mubr.msk.f32.vlgmr.msra.gmra.mrb[0].mxu1 %vm232_vm0, %v229_v5  ;;  %p797_p4 = scmp.ne.s32.totalorder %s1088_s9, %s796_s0  ;;  %s887_s20 = smov [#allocation8]  }
  0x60   : > { %378 = vmatprep.subr.mxu0 %v226_v6  ;;  %449 = vmatprep.subr.mxu1 %v228_v7  ;;  %s800_s27 = sshll.u32 %s887_s20, 4  ;;  %s801_s27 = int_to_ptr.vmem [resolvable:$false] %s800_s27 }
  0x61   : > { %379 = vmatpush1.msra.mxu0 %v225_v8  ;;  %450 = vmatpush1.msra.mxu1 %v227_v9  ;;  %v231_v10 = vstv %s230_s21  ;;  %p798_p6 = pnand %p797_p4, %p1012_p13  ;;  %s802_s28 = scalar_lea.vmem %s801_s27, 2048 }
  0x62   : > { %442 = vmatprep.mubr.f32.mxu0 %v886_v0  ;;  %513 = vmatprep.mubr.f32.mxu1 %v886_v0  ;;  %p803_p9 = scmp.lt.s32.totalorder %s1088_s9, %s801_s27  ;;  %p804_p12 = scmp.lt.s32.totalorder %s802_s28, %s796_s0 }
  0x63   : > { %655 = vmatmul.mubr.msk.f32.vlgmr.msra.gmra.mrb[2].mxu0 %vm232_vm0, %v229_v5  ;;  %656 = vmatmul.mubr.msk.f32.vlgmr.msra.gmra.mrb[2].mxu1 %vm232_vm0, %v229_v5  ;;  %p799_p8 = pneg %p798_p6 }
  0x64   : > { %p805_p0 = por %p804_p12, %p803_p9 }
  0x66   : > { %p806_p5 = pnand %p805_p0, %p799_p8 }
 0x132   : > { %v302_v11 = vpop.f32.mrb[0].mxu0  ;;  %v373_v12 = vpop.f32.mrb[0].mxu1 }
 0x133   : > { %v303_v13 = vadd.f32 %v302_v11, %v231_v10  ;;  %v374_v14 = vadd.f32 %v373_v12, %v231_v10  ;;  %v304_v15 = vpop.f32.mrb[1].mxu0  ;;  %v375_v16 = vpop.f32.mrb[1].mxu1 }
 0x134   : > { %v305_v17 = vadd.f32 %v304_v15, %v231_v10  ;;  %v376_v18 = vadd.f32 %v375_v16, %v231_v10 }
 0x135   : > { %520 = vst [vmem:[%s218_s23] sm:$0xff] %v303_v13  ;;  %522 = vst [vmem:[%s218_s23 + $0x10] sm:$0xff] %v374_v14 }
 0x136   : > { %521 = vst [vmem:[%s218_s23 + $0x8] sm:$0xff] %v305_v17  ;;  %523 = vst [vmem:[%s218_s23 + $0x18] sm:$0xff] %v376_v18  ;;  %v444_v19 = vpop.f32.mrb[2].mxu0  ;;  %v515_v20 = vpop.f32.mrb[2].mxu1 }
 0x137   : > { %v445_v21 = vadd.f32 %v444_v19, %v231_v10  ;;  %v516_v22 = vadd.f32 %v515_v20, %v231_v10  ;;  %v446_v23 = vpop.f32.mrb[3].mxu0  ;;  %v517_v24 = vpop.f32.mrb[3].mxu1 }
 0x138   : > { %v447_v25 = vadd.f32 %v446_v23, %v231_v10  ;;  %v518_v26 = vadd.f32 %v517_v24, %v231_v10 }
 0x139   : > { %524 = vst [vmem:[%s218_s23 + $0x20] sm:$0xff] %v445_v21  ;;  %526 = vst [vmem:[%s218_s23 + $0x30] sm:$0xff] %v516_v22 }
 0x13a   : > { %525 = vst [vmem:[%s218_s23 + $0x28] sm:$0xff] %v447_v25  ;;  %527 = vst [vmem:[%s218_s23 + $0x38] sm:$0xff] %v518_v26 }
 0x13b   : > { %809 = shalt.err (!%p806_p5)
}
 0x13c   : > { %s810_s4 = scalar_lea.hbm %s1086_s13, 1024  ;;  %s814_s22 = scalar_lea.hbm %s1138_s3, 2048 }
 0x13d   : > { %p811_p10 = scmp.ne.s32.totalorder %s1086_s13, %s810_s4  ;;  %p815_p7 = scmp.lt.u32.totalorder %s1086_s13, %s1138_s3 }
 0x13e   : > { %p816_p3 = scmp.lt.u32.totalorder %s814_s22, %s810_s4  ;;  %p818_p4 = scmp.lt.u32.totalorder %s810_s4, %s1086_s13 }
 0x13f   : > { %p812_p1 = pnand %p811_p10, %p1012_p13 }
 0x140   : > { %p817_p11 = por %p816_p3, %p815_p7 }
 0x141   : > { %p813_p2 = pneg %p812_p1 }
 0x142   : > { %p819_p6 = por %p818_p4, %p817_p11 }
 0x144   : > { %p820_p8 = pnand %p819_p6, %p813_p2 }
 0x146   : > { %823 = shalt.err (!%p820_p8)
}
 0x147   : > { %670 = dma.vmem_to_hbm [thread:$0]  (%p1012_p13), %s1088_s9, 1024, %s1086_s13, %s529_s17  }
 0x148 PF: > { %s557_s8 = sand.u32 1, %s862_s14   ;;  %p1157_p9 = scmp.ne.s32.totalorder %s1146_s24, 0 }
 0x149   : > { %p1158_p12 = scmp.ge.s32.totalorder %s882_s19, 2  ;;  %s558_s21 = scalar_lea.sflag [#allocation5], %s557_s8 }
 0x14b   : > { %p681_p0 = pnand %p1158_p12, %p1157_p9 }
 0x14d   : > { %857 = dma.done.wait (!%p681_p0), %s558_s21, 1024  }
 0x14e   : > { %859 = vsyncadd (!%p681_p0), %s558_s21, 4294966272  ;;  %s21_s19 = sadd.s32 1, %s882_s19   ;;  %s1159_s14 = smov %s866_s15 }
 0x14f   : > { %p18_p5 = scmp.ge.s32.totalorder %s21_s19, 4   ;;  %s1160_s15 = smov %s870_s16 }
 0x150   : > { %s1161_s16 = smov %s1020_s5  ;;  %s1162_s17 = smov %s878_s18 }
 0x151   : > { %s1163_s18 = smov %s1165_s29  ;;  %20 = sbr.rel (!%p18_p5) target bundleno = 9 (0x9), region = 82 }
 0x158   :  { %563 = vsyncpa [#allocation4], 1 }
 0x159   :  { %565 = vsyncpa [#allocation4 + $0x1], 1 }
 0x15a   :  { %566 = vsyncpa [#allocation7], 1 }
 0x15b   :  { %568 = vsyncpa [#allocation7 + $0x1], 1 }
 0x15c   :  { %569 = vsyncpa [#allocation5], 1 }
 0x15d   :  { %571 = vsyncpa [#allocation5 + $0x1], 1 }

</bundles_post_ra>
